<compile_context>
chip_gen: v7x
topology: tpu7x:2x2x1
jax: 0.10.0
libtpu: 0.0.40
codegen_flags: <defaults>
</compile_context>

<pallas_src>
import jax
import jax.numpy as jnp
from jax.experimental import pallas as pl
from jax.experimental.pallas import tpu as pltpu

H1 = 128
H2 = 64


def _round_up(x, m):
    return (x + m - 1) // m * m


def _mlp_kernel(x_ref, w1_ref, b1_ref, w2_ref, b2_ref, w3_ref, b3_ref, o_ref):
    # x tile: [TB, D] f32, streamed / double-buffered by Pallas.  Weights are
    # VMEM-resident (constant index maps) and already bf16.
    x = x_ref[...].astype(jnp.bfloat16)

    # fc1 + ReLU: bf16 MXU inputs, f32 accumulation; bias/ReLU in f32.
    h1 = jnp.dot(x, w1_ref[...], preferred_element_type=jnp.float32)      # [TB, 128]
    h1 = jnp.maximum(h1 + b1_ref[...], 0.0)

    # fc2 + ReLU.
    h2 = jnp.dot(h1.astype(jnp.bfloat16), w2_ref[...],
                 preferred_element_type=jnp.float32)                       # [TB, 64]
    h2 = jnp.maximum(h2 + b2_ref[...], 0.0)

    # fc4: contract w3 [1, 64] against h2's last dim directly (no explicit
    # h2.T relayout), putting the batch on the lane axis -> lane-dense [1, TB]
    # store instead of a [TB, 1] masked-store column.
    y = jax.lax.dot_general(
        w3_ref[...], h2.astype(jnp.bfloat16),
        dimension_numbers=(((1,), (1,)), ((), ())),
        preferred_element_type=jnp.float32)                                # [1, TB]
    o_ref[...] = y + b3_ref[0]


def _choose_block_b(B, D):
    """Byte-targeted batch tile (multiple of 128 when tiling)."""
    if B <= 256:
        return B                                  # single full-extent tile
    # Per-row VMEM bytes: double-buffered f32 x + out, f32 h1/h2, bf16 temps.
    per_row = 12 * D + 4 * (H1 + H2) + 2 * (H1 + H2) + 8
    budget = 20 * 1024 * 1024                     # ~20 MiB of per-tile buffers
    tb = max(128, (budget // per_row) // 128 * 128)
    if tb >= B:
        # Keep >= 2 tiles so the "parallel" batch axis feeds both v7x cores.
        tb = max(128, _round_up(pl.cdiv(B, 2), 128))
    return tb


def _vmem_limit_bytes(tb, D):
    weights = 2 * (D * H1 + H1 * H2 + H2) + 4 * (H1 + H2 + 1)
    per_tile = (2 * tb * D * 4            # double-buffered x tile
                + 2 * tb * 4              # double-buffered [1, tb] output
                + tb * (H1 + H2) * 4      # f32 h1 / h2
                + tb * (D + H1 + H2) * 2)  # bf16 temps
    need = weights + per_tile
    return int(min(max(need * 3 // 2 + (4 << 20), 16 << 20), 48 << 20))


def content_model_forward(x, params):
    """x: [B, input_dim] float32. Returns [B, 1] float32."""
    B, D = x.shape

    # Pre-cast matmul weights to bf16 once in the wrapper (halves resident
    # weight footprint, removes per-grid-step casts).  Biases stay f32.
    w1 = params["w1"].astype(jnp.bfloat16)
    w2 = params["w2"].astype(jnp.bfloat16)
    w3 = params["w3"].astype(jnp.bfloat16)        # stored as [1, 64]
    b1 = params["b1"]                              # [1, 128] f32
    b2 = params["b2"]                              # [1, 64]  f32
    b3 = params["b3"].reshape((1,))                # scalar f32 -> SMEM

    tb = _choose_block_b(B, D)
    n_tiles = pl.cdiv(B, tb)                       # ragged last block handled by Pallas

    flops = 2 * B * (D * H1 + H1 * H2 + H2)
    bytes_accessed = (4 * B * D + 4 * B
                      + 2 * (D * H1 + H1 * H2 + H2) + 4 * (H1 + H2 + 1))

    out_row = pl.pallas_call(
        _mlp_kernel,
        out_shape=jax.ShapeDtypeStruct((1, B), jnp.float32),
        grid=(n_tiles,),
        in_specs=[
            pl.BlockSpec((tb, D), lambda i: (i, 0)),               # x (streamed)
            pl.BlockSpec((D, H1), lambda i: (0, 0)),               # w1 (resident, bf16)
            pl.BlockSpec((1, H1), lambda i: (0, 0)),               # b1 (f32)
            pl.BlockSpec((H1, H2), lambda i: (0, 0)),              # w2 (bf16)
            pl.BlockSpec((1, H2), lambda i: (0, 0)),               # b2 (f32)
            pl.BlockSpec((1, H2), lambda i: (0, 0)),               # w3 row (bf16)
            pl.BlockSpec(memory_space=pltpu.MemorySpace.SMEM),     # b3 scalar
        ],
        out_specs=pl.BlockSpec((1, tb), lambda i: (0, i)),         # lane-dense row
        compiler_params=pltpu.CompilerParams(
            dimension_semantics=("parallel",),
            vmem_limit_bytes=_vmem_limit_bytes(tb, D),
        ),
        cost_estimate=pl.CostEstimate(
            flops=flops, transcendentals=0, bytes_accessed=bytes_accessed),
    )(x, w1, b1, w2, b2, w3, b3)

    # [1, B] lane-dense slab -> [B, 1] column (layout plumbing only).
    return out_row.reshape(B, 1)


def init_params(key, input_dim):
    """Deterministic synthetic init (PyTorch-style uniform fan-in bounds)."""
    ks = jax.random.split(key, 6)

    def lin(kw, kb, fan_in, fan_out, row_major_out=False):
        bound = 1.0 / jnp.sqrt(jnp.float32(fan_in))
        shape = (fan_out, fan_in) if row_major_out else (fan_in, fan_out)
        w = jax.random.uniform(kw, shape, jnp.float32, -bound, bound)
        b = jax.random.uniform(kb, (1, fan_out), jnp.float32, -bound, bound)
        return w, b

    w1, b1 = lin(ks[0], ks[1], input_dim, H1)
    w2, b2 = lin(ks[2], ks[3], H1, H2)
    w3, b3 = lin(ks[4], ks[5], H2, 1, row_major_out=True)   # stored as [1, 64]
    return {"w1": w1, "b1": b1, "w2": w2, "b2": b2, "w3": w3, "b3": b3}


def _reference_forward(x, p):
    h1 = jnp.maximum(x @ p["w1"] + p["b1"], 0.0)
    h2 = jnp.maximum(h1 @ p["w2"] + p["b2"], 0.0)
    return h2 @ p["w3"].T + p["b3"]


if __name__ == "__main__":
    key = jax.random.PRNGKey(0)
    k_params, k_x1, k_x2 = jax.random.split(key, 3)

    input_dim = 32
    params = init_params(k_params, input_dim)
    fwd = jax.jit(content_model_forward)

    # Case 1: small batch -> single full-extent tile.
    x1 = jax.random.normal(k_x1, (50, input_dim), jnp.float32)
    out1 = jax.block_until_ready(fwd(x1, params))
    ref1 = _reference_forward(x1, params)
    assert out1.shape == (50, 1)
    # bf16 MXU inputs (f32 accumulation) -> loosened tolerance vs f32 reference.
    assert jnp.allclose(out1, ref1, atol=3e-2, rtol=3e-2), "mismatch (single tile)"

    # Case 2: multi-tile grid with a ragged last block (300 rows, 256-row
    # tiles) -> exercises megacore sharding + masked tail writes.
    x2 = jax.random.normal(k_x2, (300, input_dim), jnp.float32)
    out2 = jax.block_until_ready(fwd(x2, params))
    ref2 = _reference_forward(x2, params)
    assert out2.shape == (300, 1)
    assert jnp.allclose(out2, ref2, atol=3e-2, rtol=3e-2), "mismatch (ragged grid)"

    print("KERNEL_OK")
</pallas_src>

<mosaic_0001>
module attributes {stable_mosaic.version = 11 : i64} {
  func.func @_mlp_kernel(%arg0: i32, %arg1: memref<50x32xf32, #tpu.memory_space<vmem>>, %arg2: memref<32x128xbf16, #tpu.memory_space<vmem>>, %arg3: memref<1x128xf32, #tpu.memory_space<vmem>>, %arg4: memref<128x64xbf16, #tpu.memory_space<vmem>>, %arg5: memref<1x64xf32, #tpu.memory_space<vmem>>, %arg6: memref<1x64xbf16, #tpu.memory_space<vmem>>, %arg7: memref<1xf32, #tpu.memory_space<smem>>, %arg8: memref<1x50xf32, #tpu.memory_space<vmem>>) attributes {dimension_semantics = [#tpu.dimension_semantics<parallel>], iteration_bounds = array<i64: 1>, scalar_prefetch = 0 : i64, scratch_operands = 0 : i64, tpu.core_type = #tpu.core_type<tc>, window_params = [{transform_indices = @transform_0, window_bounds = array<i64: 50, 32>}, {pipeline_mode = #tpu.pipeline_mode<synchronous>, transform_indices = @transform_1, window_bounds = array<i64: 32, 128>}, {pipeline_mode = #tpu.pipeline_mode<synchronous>, transform_indices = @transform_2, window_bounds = array<i64: 1, 128>}, {pipeline_mode = #tpu.pipeline_mode<synchronous>, transform_indices = @transform_3, window_bounds = array<i64: 128, 64>}, {pipeline_mode = #tpu.pipeline_mode<synchronous>, transform_indices = @transform_4, window_bounds = array<i64: 1, 64>}, {pipeline_mode = #tpu.pipeline_mode<synchronous>, transform_indices = @transform_5, window_bounds = array<i64: 1, 64>}, {transform_indices = @transform_6, window_bounds = array<i64: 1>}, {transform_indices = @transform_7, window_bounds = array<i64: 1, 50>}]} {
    %c0 = arith.constant 0 : index
    %c0_0 = arith.constant 0 : index
    %0 = vector.load %arg1[%c0, %c0_0] : memref<50x32xf32, #tpu.memory_space<vmem>>, vector<50x32xf32>
    %1 = arith.truncf %0 : vector<50x32xf32> to vector<50x32xbf16>
    %c0_1 = arith.constant 0 : index
    %c0_2 = arith.constant 0 : index
    %2 = vector.load %arg2[%c0_1, %c0_2] : memref<32x128xbf16, #tpu.memory_space<vmem>>, vector<32x128xbf16>
    %cst = arith.constant dense<0.000000e+00> : vector<50x128xf32>
    %3 = tpu.matmul %1, %2, %cst {dimension_numbers = #tpu.dot_dimension_numbers<[1], [0], [0], [1], [0, 0, 1, 1], [], []>} : vector<50x32xbf16>, vector<32x128xbf16>, vector<50x128xf32> -> vector<50x128xf32>
    %c0_3 = arith.constant 0 : index
    %c0_4 = arith.constant 0 : index
    %4 = vector.load %arg3[%c0_3, %c0_4] : memref<1x128xf32, #tpu.memory_space<vmem>>, vector<1x128xf32>
    %5 = vector.broadcast %4 : vector<1x128xf32> to vector<50x128xf32>
    %6 = arith.addf %3, %5 : vector<50x128xf32>
    %cst_5 = arith.constant 0.000000e+00 : f32
    %7 = vector.broadcast %cst_5 : f32 to vector<50x128xf32>
    %8 = arith.maximumf %6, %7 : vector<50x128xf32>
    %9 = arith.truncf %8 : vector<50x128xf32> to vector<50x128xbf16>
    %c0_6 = arith.constant 0 : index
    %c0_7 = arith.constant 0 : index
    %10 = vector.load %arg4[%c0_6, %c0_7] : memref<128x64xbf16, #tpu.memory_space<vmem>>, vector<128x64xbf16>
    %cst_8 = arith.constant dense<0.000000e+00> : vector<50x64xf32>
    %11 = tpu.matmul %9, %10, %cst_8 {dimension_numbers = #tpu.dot_dimension_numbers<[1], [0], [0], [1], [0, 0, 1, 1], [], []>} : vector<50x128xbf16>, vector<128x64xbf16>, vector<50x64xf32> -> vector<50x64xf32>
    %c0_9 = arith.constant 0 : index
    %c0_10 = arith.constant 0 : index
    %12 = vector.load %arg5[%c0_9, %c0_10] : memref<1x64xf32, #tpu.memory_space<vmem>>, vector<1x64xf32>
    %13 = vector.broadcast %12 : vector<1x64xf32> to vector<50x64xf32>
    %14 = arith.addf %11, %13 : vector<50x64xf32>
    %cst_11 = arith.constant 0.000000e+00 : f32
    %15 = vector.broadcast %cst_11 : f32 to vector<50x64xf32>
    %16 = arith.maximumf %14, %15 : vector<50x64xf32>
    %c0_12 = arith.constant 0 : index
    %c0_13 = arith.constant 0 : index
    %17 = vector.load %arg6[%c0_12, %c0_13] : memref<1x64xbf16, #tpu.memory_space<vmem>>, vector<1x64xbf16>
    %18 = arith.truncf %16 : vector<50x64xf32> to vector<50x64xbf16>
    %cst_14 = arith.constant dense<0.000000e+00> : vector<1x50xf32>
    %19 = tpu.matmul %17, %18, %cst_14 {dimension_numbers = #tpu.dot_dimension_numbers<[1], [1], [0], [0], [0, 0, 1, 0], [], []>} : vector<1x64xbf16>, vector<50x64xbf16>, vector<1x50xf32> -> vector<1x50xf32>
    %c0_15 = arith.constant 0 : index
    %20 = memref.load %arg7[%c0_15] : memref<1xf32, #tpu.memory_space<smem>>
    %21 = vector.broadcast %20 : f32 to vector<1x50xf32>
    %22 = arith.addf %19, %21 : vector<1x50xf32>
    %c0_16 = arith.constant 0 : index
    %c0_17 = arith.constant 0 : index
    %23 = vector.load %arg8[%c0_16, %c0_17] : memref<1x50xf32, #tpu.memory_space<vmem>>, vector<1x50xf32>
    tpu.vector_store %arg8[%c0_16, %c0_17], %22 {strides = array<i32>} : memref<1x50xf32, #tpu.memory_space<vmem>>, vector<1x50xf32>,
    return
  }
  func.func @transform_0(%arg0: i32) -> (i32, i32) {
    %c0_i32 = arith.constant 0 : i32
    %c0_i32_0 = arith.constant 0 : i32
    return %arg0, %c0_i32 : i32, i32
  }
  func.func @transform_1(%arg0: i32) -> (i32, i32) {
    %c0_i32 = arith.constant 0 : i32
    %c0_i32_0 = arith.constant 0 : i32
    %c0_i32_1 = arith.constant 0 : i32
    return %c0_i32, %c0_i32_0 : i32, i32
  }
  func.func @transform_2(%arg0: i32) -> (i32, i32) {
    %c0_i32 = arith.constant 0 : i32
    %c0_i32_0 = arith.constant 0 : i32
    %c0_i32_1 = arith.constant 0 : i32
    return %c0_i32, %c0_i32_0 : i32, i32
  }
  func.func @transform_3(%arg0: i32) -> (i32, i32) {
    %c0_i32 = arith.constant 0 : i32
    %c0_i32_0 = arith.constant 0 : i32
    %c0_i32_1 = arith.constant 0 : i32
    return %c0_i32, %c0_i32_0 : i32, i32
  }
  func.func @transform_4(%arg0: i32) -> (i32, i32) {
    %c0_i32 = arith.constant 0 : i32
    %c0_i32_0 = arith.constant 0 : i32
    %c0_i32_1 = arith.constant 0 : i32
    return %c0_i32, %c0_i32_0 : i32, i32
  }
  func.func @transform_5(%arg0: i32) -> (i32, i32) {
    %c0_i32 = arith.constant 0 : i32
    %c0_i32_0 = arith.constant 0 : i32
    %c0_i32_1 = arith.constant 0 : i32
    return %c0_i32, %c0_i32_0 : i32, i32
  }
  func.func @transform_6(%arg0: i32) -> i32 {
    %c0_i32 = arith.constant 0 : i32
    %c0_i32_0 = arith.constant 0 : i32
    return %c0_i32 : i32
  }
  func.func @transform_7(%arg0: i32) -> (i32, i32) {
    %c0_i32 = arith.constant 0 : i32
    %c0_i32_0 = arith.constant 0 : i32
    return %c0_i32, %arg0 : i32, i32
  }
}

</mosaic_0001>

<bundles_post_ra>
// kernel: content_model_forward.1
= control target key start
LH: loop header
LB: loop body
LE: loop exit
PB: predicated region body
PF: predicated region fallthrough
CT: control target
= control target key end

     0   :  { %vm63_vm0 = vcmask 261120   ;;  %s624_s0 = inlined_call_operand.vmem [shape: f32[50,32], index: 0, kind: input, shape index: {}]   ;;  %s625_s1 = inlined_call_operand.vmem [shape: bf16[32,128], index: 1, kind: input, shape index: {}]   ;;  %s626_s2 = inlined_call_operand.vmem [shape: f32[1,128], index: 2, kind: input, shape index: {}]   ;;  %s627_s3 = inlined_call_operand.vmem [shape: bf16[128,64], index: 3, kind: input, shape index: {}]   ;;  %s628_s4 = inlined_call_operand.vmem [shape: f32[1,64], index: 4, kind: input, shape index: {}]   ;;  %s629_s5 = inlined_call_operand.vmem [shape: bf16[1,64], index: 5, kind: input, shape index: {}]   ;;  %s630_s6 = inlined_call_operand.<no memory space> [shape: f32[1], index: 6, kind: input, shape index: {}]   ;;  %s631_s7 = inlined_call_operand.hbm [shape: f32[1,50], index: 7, kind: output, shape index: {}]  }
   0x1   :  { %v463_v0 = vld [vmem:[%s625_s1] sm:$0xff]   ;;  %v464_v1 = vld [vmem:[%s625_s1 + $0x8] sm:$0xff]   ;;  %v31_v5 = vld [vmem:[%s624_s0 + $0x10] sm:$0xff] }
   0x2   :  { %412 = vmatprep.subr.bf16.mxu0 %v463_v0  ;;  %v29_v2 = vld [vmem:[%s624_s0] sm:$0xff]  ;;  %v30_v3 = vld [vmem:[%s624_s0 + $0x8] sm:$0xff]  ;;  %v32_v6 = vld [vmem:[%s624_s0 + $0x18] sm:$0xff] }
   0x3   :  { %413 = vmatpush3.bf16.msra.mxu0 %v463_v0  ;;  %v36_v4 = vpack.c.bf16 %v30_v3, %v29_v2  ;;  %v33_v7 = vld [vmem:[%s624_s0 + $0x20] sm:$0xff]  ;;  %v34_v8 = vld [vmem:[%s624_s0 + $0x28] sm:$0xff]  ;;  %v37_v10 = vpack.c.bf16 %v32_v6, %v31_v5  ;;  %v467_v13 = vld [vmem:[%s627_s3 + $0x10] sm:$0xff]  }
   0x4   :  { %414 = vmatprep.subr.bf16.mxu0 %v464_v1  ;;  %v465_v9 = vld [vmem:[%s627_s3] sm:$0xff]   ;;  %v466_v11 = vld [vmem:[%s627_s3 + $0x8] sm:$0xff]   ;;  %v38_v12 = vpack.c.bf16 %v34_v8, %v33_v7  ;;  %v35_v14 = vld [vmem:[%s624_s0 + $0x30] sm:$0x3] }
   0x5   :  { %416 = vmatprep.mubr.msk.bf16.mxu0 %vm63_vm0, %v36_v4  ;;  %424 = vmatprep.subr.bf16.mxu1 %v465_v9 }
   0x6   :  { %425 = vmatpush3.bf16.msra.mxu1 %v465_v9 }
   0x7   :  { %415 = vmatpush3.bf16.msra.mxu0 %v464_v1  ;;  %426 = vmatprep.subr.bf16.mxu1 %v466_v11 }
   0xa   :  { %417 = vmatmul.mubr.msk.bf16.vlgmr.msra.gmra.mrb[0].mxu0 %vm63_vm0, %v37_v10 }
   0xb   :  { %420 = vmatprep.mubr.msk.bf16.mxu0 %vm63_vm0, %v38_v12 }
   0xc   :  { %13 = vsyncpa [#allocation4], 0  ;;  %427 = vmatpush3.bf16.msra.mxu1 %v466_v11  ;;  %v468_v15 = vld [vmem:[%s627_s3 + $0x18] sm:$0xff]   ;;  %v39_v16 = vpack.c.bf16 %v35_v14, %v35_v14  ;;  %v469_v17 = vld [vmem:[%s627_s3 + $0x20] sm:$0xff]   ;;  %v497_v48 = vmov 0.0   ;;  %vm498_vm1 = vmmov 0  }
   0xd   :  { %428 = vmatprep.subr.bf16.mxu1 %v467_v13  ;;  %v470_v18 = vld [vmem:[%s627_s3 + $0x28] sm:$0xff]   ;;  %v471_v19 = vld [vmem:[%s627_s3 + $0x30] sm:$0xff]   ;;  %v472_v20 = vld [vmem:[%s627_s3 + $0x38] sm:$0xff]   ;;  %448 = vmatprep.subr.bf16.mxu0 %v497_v48  ;;  %vm300_vm2 = vcmask 523264   ;;  %s499_s14 = smov [#allocation3]   ;;  %vm356_vm3 = vcmask 401408  }
   0xe   :  { %v372_v21 = vld [vmem:[%s626_s2] ss:$0 sm:$0xff]  ;;  %s364_s15 = sshll.u32 %s499_s14, 4  ;;  %s365_s15 = int_to_ptr.vmem [resolvable:$true] %s364_s15 }
   0xf   :  { %v379_v49 = vld [vmem:[%s628_s4] ss:$0 sm:$0xff]  ;;  %s473_s16 = scalar_lea.vmem %s365_s15, 16  ;;  %s477_s17 = scalar_lea.vmem %s365_s15, 32 }
  0x10   :  { %429 = vmatpush3.bf16.msra.mxu1 %v467_v13  ;;  %p474_p0 = scmp.ne.s32.totalorder %s365_s15, %s473_s16  ;;  %p478_p1 = scmp.lt.s32.totalorder %s365_s15, %s365_s15 }
  0x11   :  { %430 = vmatprep.subr.bf16.mxu1 %v468_v15  ;;  %p479_p2 = scmp.lt.s32.totalorder %s477_s17, %s473_s16 }
  0x12   :  { %421 = vmatmul.mubr.msk.bf16.gmra.mrb[4].mxu0 %vm63_vm0, %v39_v16  ;;  %v293_v16 = vld [vmem:[%s629_s5] sm:$0x1] }
  0x13   :  { %456 = vmatprep.mubr.msk.bf16.mxu0 %vm498_vm1, %v497_v48  ;;  %p480_p3 = por %p479_p2, %p478_p1 }
  0x14   :  { %431 = vmatpush3.bf16.msra.mxu1 %v468_v15 }
  0x15   :  { %432 = vmatprep.subr.bf16.mxu1 %v469_v17  ;;  %p481_p4 = pnand %p480_p3, %p474_p0 }
  0x18   :  { %433 = vmatpush3.bf16.msra.mxu1 %v469_v17  ;;  %v299_v17 = vstv %s630_s6 }
  0x19   :  { %434 = vmatprep.subr.bf16.mxu1 %v470_v18 }
  0x1c   :  { %435 = vmatpush3.bf16.msra.mxu1 %v470_v18 }
  0x1d   :  { %436 = vmatprep.subr.bf16.mxu1 %v471_v19 }
  0x20   :  { %437 = vmatpush3.bf16.msra.mxu1 %v471_v19 }
  0x21   :  { %438 = vmatprep.subr.bf16.mxu1 %v472_v20 }
  0x24   :  { %439 = vmatpush3.bf16.msra.mxu1 %v472_v20 }
  0xdd   :  { %v418_v22 = vpop.f32.mrb[0].mxu0 }
  0xde   :  { %v119_v23 = vadd.f32 %v418_v22, %v372_v21  ;;  %v110_v24 = vpop.f32.mrb[1].mxu0 }
  0xdf   :  { %v111_v25 = vadd.f32 %v372_v21, %v110_v24  ;;  %v419_v26 = vpop.f32.mrb[2].mxu0 }
  0xe0   :  { %v122_v27 = vadd.f32 %v419_v26, %v372_v21  ;;  %v113_v28 = vpop.f32.mrb[3].mxu0  ;;  %v142_v30 = vmax.f32 %v119_v23, 0.0 }
  0xe1   :  { %v114_v29 = vadd.f32 %v372_v21, %v113_v28  ;;  %v140_v32 = vmax.f32 %v111_v25, 0.0 }
  0xe2   :  { %v143_v31 = vmax.f32 %v122_v27, 0.0 }
  0xe3   :  { %v141_v33 = vmax.f32 %v114_v29, 0.0 }
  0xe4   :  { %v148_v34 = vpack.c.bf16 %v143_v31, %v142_v30 }
  0xe5   :  { %v422_v35 = vpop.f32.mrb[4].mxu0  ;;  %v147_v36 = vpack.c.bf16 %v141_v33, %v140_v32 }
  0xe6   :  { %v135_v37 = vadd.f32 %v422_v35, %v372_v21  ;;  %v126_v38 = vpop.f32.mrb[5].mxu0 }
  0xe7   :  { %v127_v39 = vadd.f32 %v372_v21, %v126_v38  ;;  %440 = vmatprep.mubr.bf16.mxu1 %v147_v36  ;;  %v423_v40 = vpop.f32.mrb[6].mxu0 }
  0xe8   :  { %v146_v41 = vmax.f32 %v135_v37, 0.0  ;;  %441 = vmatmul.mubr.bf16.vlgmr.msra.gmra.mrb[0].mxu1 %v148_v34  ;;  %v129_v42 = vpop.f32.mrb[7].mxu0 }
  0xe9   :  { %v144_v43 = vmax.f32 %v127_v39, 0.0  ;;  %v130_v44 = vadd.f32 %v372_v21, %v129_v42 }
  0xea   :  { %v150_v46 = vpack.c.bf16 %v146_v41, %v146_v41 }
  0xeb   :  { %v145_v45 = vmax.f32 %v130_v44, 0.0 }
  0xed   :  { %v149_v47 = vpack.c.bf16 %v145_v45, %v144_v43 }
  0xef   :  { %444 = vmatprep.mubr.bf16.mxu1 %v149_v47 }
  0xf0   :  { %445 = vmatmul.mubr.bf16.gmra.mrb[4].mxu1 %v150_v46 }
 0x1bb   :  { %v442_v50 = vpop.f32.mrb[0].mxu1 }
 0x1bc   :  { %v265_v51 = vadd.f32 %v442_v50, %v379_v49  ;;  %v256_v52 = vpop.f32.mrb[1].mxu1 }
 0x1bd   :  { %v257_v53 = vadd.f32 %v379_v49, %v256_v52  ;;  %v443_v54 = vpop.f32.mrb[2].mxu1 }
 0x1be   :  { %v268_v55 = vadd.f32 %v443_v54, %v379_v49  ;;  %v259_v56 = vpop.f32.mrb[3].mxu1  ;;  %v288_v58 = vmax.f32 %v265_v51, 0.0 }
 0x1bf   :  { %v260_v57 = vadd.f32 %v379_v49, %v259_v56  ;;  %v286_v60 = vmax.f32 %v257_v53, 0.0 }
 0x1c0   :  { %v289_v59 = vmax.f32 %v268_v55, 0.0 }
 0x1c1   :  { %v287_v61 = vmax.f32 %v260_v57, 0.0 }
 0x1c2   :  { %v295_v62 = vpack.c.bf16 %v289_v59, %v288_v58 }
 0x1c3   :  { %v294_v63 = vpack.c.bf16 %v287_v61, %v286_v60  ;;  %v446_v0 = vpop.f32.mrb[4].mxu1 }
 0x1c4   :  { %v272_v1 = vpop.f32.mrb[5].mxu1  ;;  %v308_v10 = vsel %vm300_vm2, %v295_v62, 0  ;;  %v281_v11 = vadd.f32 %v446_v0, %v379_v49 }
 0x1c5   :  { %v273_v2 = vadd.f32 %v379_v49, %v272_v1  ;;  %v447_v3 = vpop.f32.mrb[6].mxu1  ;;  %v305_v4 = vsel %vm300_vm2, %v294_v63, 0 }
 0x1c6   :  { %449 = vmatpush3.bf16.xpose.msra.mxu0 %v305_v4  ;;  %v275_v5 = vpop.f32.mrb[7].mxu1  ;;  %v292_v12 = vmax.f32 %v281_v11, 0.0 }
 0x1c7   :  { %v290_v6 = vmax.f32 %v273_v2, 0.0  ;;  %v276_v7 = vadd.f32 %v379_v49, %v275_v5  ;;  %450 = vmatprep.subr.bf16.mxu0 %v497_v48 }
 0x1c8   :  { %v297_v14 = vpack.c.bf16 %v292_v12, %v292_v12 }
 0x1c9   :  { %v291_v8 = vmax.f32 %v276_v7, 0.0 }
 0x1ca   :  { %v314_v15 = vsel %vm300_vm2, %v297_v14, 0 }
 0x1cb   :  { %v296_v9 = vpack.c.bf16 %v291_v8, %v290_v6 }
 0x1cd   :  { %v311_v13 = vsel %vm300_vm2, %v296_v9, 0 }
 0x1ce   :  { %451 = vmatpush3.bf16.xpose.msra.mxu0 %v308_v10 }
 0x1cf   :  { %452 = vmatprep.subr.bf16.mxu0 %v497_v48 }
 0x1d6   :  { %453 = vmatpush3.bf16.xpose.msra.mxu0 %v311_v13 }
 0x1d7   :  { %454 = vmatprep.subr.bf16.mxu0 %v497_v48 }
 0x1de   :  { %455 = vmatpush3.bf16.xpose.msra.mxu0 %v314_v15 }
 0x1e5   :  { %457 = vmatmul.mubr.msk.bf16.vlgmr.msra.gmra.mrb[8].mxu0 %vm300_vm2, %v293_v16 }
 0x2b8   :  { %v350_v18 = vpop.f32.mrb[8].mxu0 }
 0x2b9   :  { %v351_v19 = vadd.f32 %v350_v18, %v299_v17  ;;  %v458_v20 = vpop.f32.mrb[9].mxu0 }
 0x2ba   :  { %v353_v21 = vpop.f32.mrb[10].mxu0 }
 0x2bb   :  { %v459_v22 = vpop.f32.mrb[11].mxu0  ;;  %357 = vst.msk [vmem:[#allocation3] sm:$0x1] %vm356_vm3, %v351_v19 }
 0x2bc   :  { %484 = shalt.err (!%p481_p4)
}
 0x2bd   :  { %s485_s18 = scalar_lea.hbm %s631_s7, 16 }
 0x2be   :  { %p486_p5 = scmp.ne.s32.totalorder %s631_s7, %s485_s18  ;;  %p489_p6 = scmp.lt.u32.totalorder %s485_s18, %s631_s7 }
 0x2c0   :  { %p491_p7 = pnand %p489_p6, %p486_p5 }
 0x2c2   :  { %494 = shalt.err (!%p491_p7)
}
 0x2c3   :  { %367 = dma.vmem_to_hbm [thread:$0]  %s365_s15, 16, %s631_s7, [#allocation4]  }
 0x2c4   :  { %495 = dma.done.wait [#allocation4], 16  }
 0x2c5   :  { %496 = vsyncadd [#allocation4], 4294967280 }
 0x2c6   :  { %371 = vsyncpa [#allocation4], 1 }

</bundles_post_ra>
